<compile_context>
chip_gen: v7x
topology: tpu7x:2x2x1
jax: 0.10.0
libtpu: 0.0.40
codegen_flags: <defaults>
</compile_context>

<pallas_src>
import math

import jax
import jax.numpy as jnp
from jax.experimental import pallas as pl
from jax.experimental.pallas import tpu as pltpu


def _pe_add_kernel(w_ref, pe_ref, x_ref, o_ref):
    # w_ref: SMEM (1,) scalar; pe_ref: VMEM (TR, C); x_ref/o_ref: VMEM (TR, C)
    # (batch dim squeezed out of x/o blocks -> straight elementwise VPU ops).
    o_ref[...] = x_ref[...] + w_ref[0] * pe_ref[...]


def _choose_row_tile(rows, cols, itemsize, target_bytes=2 << 20):
    """Rows per tile: multiple of 8, ~target_bytes per x tile, capped at rows."""
    tr = (target_bytes // max(1, cols * itemsize)) // 8 * 8
    tr = max(8, tr)
    return rows if tr >= rows else tr


def positional_encoding_forward(x, pe, weight):
    """x: (B, S, D); pe: (max_len, D); weight: (1,). Returns (B, S, D)."""
    B, S, D = x.shape
    max_len, D_pe = pe.shape
    assert D_pe == D, "pe feature dim must match x"
    assert S <= max_len, "sequence length exceeds positional-encoding table"
    itemsize = x.dtype.itemsize

    # ---- pick a lane-dense 2D view of the per-batch (S, D) slab -------------
    if D % 128 == 0:
        # Natural layout already lane-dense: tile S; pass the FULL pe buffer and
        # let the BlockSpec (not an XLA slice) select the rows < S it touches.
        rows, cols = S, D
        x2 = x
        pe2 = pe
        pe_rows = max_len
    elif (S * D) % 128 == 0:
        # Small D (demo: D=32): flatten (S, D) -> (rows, 128) so output stores
        # are unmasked full-lane vst. Elementwise correspondence is preserved.
        cols = 128
        rows = (S * D) // 128
        x2 = x.reshape(B, rows, cols)
        pe2 = pe[:S, :].reshape(rows, cols)  # contiguous reshape of a small slice
        pe_rows = rows
    else:
        # Fallback: natural layout, pre-sliced pe so blocks can be full-extent.
        rows, cols = S, D
        x2 = x
        pe2 = pe[:S, :]
        pe_rows = rows

    tr = _choose_row_tile(rows, cols, itemsize)
    if tr % 8 != 0 and tr != pe_rows:
        # (8,128) rule: pe block rows must be 8-divisible or full-extent.
        # tr % 8 != 0 only happens when tr == rows < 8, so make pe full-extent too.
        pe2 = pe2[:rows, :]
        pe_rows = rows

    num_r = pl.cdiv(rows, tr)
    grid = (num_r, B)  # row tiles OUTER, batch INNER -> pe tile reused across B

    out2 = pl.pallas_call(
        _pe_add_kernel,
        out_shape=jax.ShapeDtypeStruct((B, rows, cols), x.dtype),
        grid=grid,
        in_specs=[
            pl.BlockSpec(memory_space=pltpu.SMEM),                   # weight (1,)
            pl.BlockSpec((tr, cols), lambda r, b: (r, 0)),           # pe tile
            pl.BlockSpec((None, tr, cols), lambda r, b: (b, r, 0)),  # x tile (batch squeezed)
        ],
        out_specs=pl.BlockSpec((None, tr, cols), lambda r, b: (b, r, 0)),
        compiler_params=pltpu.CompilerParams(
            dimension_semantics=("parallel", "parallel"),
        ),
        cost_estimate=pl.CostEstimate(
            flops=2 * B * rows * cols,
            transcendentals=0,
            bytes_accessed=(2 * B * rows * cols + rows * cols) * itemsize,
        ),
    )(weight, pe2, x2)

    return out2.reshape(B, S, D)


def make_pe_buffer(max_len, d_model, dtype=jnp.float32):
    """Deterministic sin/cos positional-encoding table (same math as PyTorch)."""
    position = jnp.arange(0, max_len, dtype=jnp.float32)[:, None]          # (L, 1)
    div_term = jnp.exp(
        jnp.arange(0, d_model, 2, dtype=jnp.float32)
        * (-math.log(10000.0) / d_model)
    )                                                                       # (D/2,)
    angles = position * div_term                                            # (L, D/2)
    pe = jnp.zeros((max_len, d_model), dtype=jnp.float32)
    pe = pe.at[:, 0::2].set(jnp.sin(angles))
    pe = pe.at[:, 1::2].set(jnp.cos(angles))
    return pe.astype(dtype)


def reference_forward(x, pe, weight):
    """Pure-JAX reference (eval mode: dropout = identity)."""
    S = x.shape[1]
    return x + weight[0] * pe[None, :S, :]


if __name__ == "__main__":
    B, S, D = 2, 8, 32
    MAX_LEN = 64

    key = jax.random.PRNGKey(0)
    x = jax.random.normal(key, (B, S, D), dtype=jnp.float32)

    # Deterministic parameter init matching nn.Parameter(torch.ones(1))
    weight = jnp.ones((1,), dtype=jnp.float32)
    pe = make_pe_buffer(MAX_LEN, D)

    out = positional_encoding_forward(x, pe, weight)
    out = jax.block_until_ready(out)

    ref = reference_forward(x, pe, weight)
    assert out.shape == (B, S, D)
    assert jnp.allclose(out, ref, atol=1e-6, rtol=1e-6)

    print("KERNEL_OK")
</pallas_src>

<mosaic_0001>
module attributes {stable_mosaic.version = 11 : i64} {
  func.func @_pe_add_kernel(%arg0: i32, %arg1: i32, %arg2: memref<1xf32, #tpu.memory_space<smem>>, %arg3: memref<2x128xf32, #tpu.memory_space<vmem>>, %arg4: memref<1x2x128xf32, #tpu.memory_space<vmem>>, %arg5: memref<1x2x128xf32, #tpu.memory_space<vmem>>) attributes {dimension_semantics = [#tpu.dimension_semantics<parallel>, #tpu.dimension_semantics<parallel>], iteration_bounds = array<i64: 1, 2>, scalar_prefetch = 0 : i64, scratch_operands = 0 : i64, tpu.core_type = #tpu.core_type<tc>, window_params = [{transform_indices = @transform_0, window_bounds = array<i64: 1>}, {transform_indices = @transform_1, window_bounds = array<i64: 2, 128>}, {transform_indices = @transform_2, window_bounds = array<i64: 1, 2, 128>}, {transform_indices = @transform_3, window_bounds = array<i64: 1, 2, 128>}]} {
    %c0 = arith.constant 0 : index
    %c0_0 = arith.constant 0 : index
    %c0_1 = arith.constant 0 : index
    %0 = vector.load %arg4[%c0, %c0_0, %c0_1] : memref<1x2x128xf32, #tpu.memory_space<vmem>>, vector<1x2x128xf32>
    %1 = vector.shape_cast %0 : vector<1x2x128xf32> to vector<2x128xf32>
    %c0_2 = arith.constant 0 : index
    %2 = memref.load %arg2[%c0_2] : memref<1xf32, #tpu.memory_space<smem>>
    %c0_3 = arith.constant 0 : index
    %c0_4 = arith.constant 0 : index
    %3 = vector.load %arg3[%c0_3, %c0_4] : memref<2x128xf32, #tpu.memory_space<vmem>>, vector<2x128xf32>
    %4 = vector.broadcast %2 : f32 to vector<2x128xf32>
    %5 = arith.mulf %4, %3 : vector<2x128xf32>
    %6 = arith.addf %1, %5 : vector<2x128xf32>
    %c0_5 = arith.constant 0 : index
    %c0_6 = arith.constant 0 : index
    %c0_7 = arith.constant 0 : index
    %7 = vector.load %arg5[%c0_5, %c0_6, %c0_7] : memref<1x2x128xf32, #tpu.memory_space<vmem>>, vector<1x2x128xf32>
    %8 = vector.shape_cast %7 : vector<1x2x128xf32> to vector<2x128xf32>
    %9 = vector.shape_cast %6 : vector<2x128xf32> to vector<1x2x128xf32>
    tpu.vector_store %arg5[%c0_5, %c0_6, %c0_7], %9 {strides = array<i32>} : memref<1x2x128xf32, #tpu.memory_space<vmem>>, vector<1x2x128xf32>,
    return
  }
  func.func @transform_0(%arg0: i32, %arg1: i32) -> i32 {
    %c0_i32 = arith.constant 0 : i32
    %c0_i32_0 = arith.constant 0 : i32
    return %c0_i32 : i32
  }
  func.func @transform_1(%arg0: i32, %arg1: i32) -> (i32, i32) {
    %c0_i32 = arith.constant 0 : i32
    %c0_i32_0 = arith.constant 0 : i32
    return %arg0, %c0_i32 : i32, i32
  }
  func.func @transform_2(%arg0: i32, %arg1: i32) -> (i32, i32, i32) {
    %c0_i32 = arith.constant 0 : i32
    %c0_i32_0 = arith.constant 0 : i32
    return %arg1, %arg0, %c0_i32 : i32, i32, i32
  }
  func.func @transform_3(%arg0: i32, %arg1: i32) -> (i32, i32, i32) {
    %c0_i32 = arith.constant 0 : i32
    %c0_i32_0 = arith.constant 0 : i32
    return %arg1, %arg0, %c0_i32 : i32, i32, i32
  }
}

</mosaic_0001>

<bundles_post_ra>
// kernel: tpu_custom_call.1
= control target key start
LH: loop header
LB: loop body
LE: loop exit
PB: predicated region body
PF: predicated region fallthrough
CT: control target
= control target key end

     0   :  { %s603_s0 = inlined_call_operand.<no memory space> [shape: f32[1], index: 0, kind: input, shape index: {}]   ;;  %s604_s1 = inlined_call_operand.vmem [shape: f32[2,128], index: 1, kind: input, shape index: {}]   ;;  %s605_s2 = inlined_call_operand.vmem [shape: f32[2,2,128], index: 2, kind: input, shape index: {}]   ;;  %s606_s3 = inlined_call_operand.hbm [shape: f32[2,2,128], index: 3, kind: output, shape index: {}]  }
   0x1   :  { %8 = sst [smem:[#allocation2]] %s603_s0 }
   0x2   :  { %9 = vsyncpa [#allocation4], 0 }
   0x3   :  { %11 = vsyncpa [#allocation4 + $0x1], 0  ;;  %s488_s14 = smov 0   ;;  %s490_s15 = smov 0  }
   0x4   :  { %s492_s16 = smov 0   ;;  %s494_s17 = smov 0  }
   0x5   :  { %s496_s18 = smov 0   ;;  %s498_s19 = smov 0  }
   0x6 LB: > { %s317_s0 = sadd.s32 4294967295, %s462_s19   ;;  %s318_s20 = sadd.s32 4294967294, %s462_s19   ;;  %s462_s19 = sphi %s498_s19, %s17_s19   ;;  %s458_s18 = sphi %s496_s18, %s613_s18   ;;  %s454_s17 = sphi %s494_s17, %s612_s17   ;;  %s450_s16 = sphi %s492_s16, %s611_s16   ;;  %s446_s15 = sphi %s490_s15, %s610_s15   ;;  %s442_s14 = sphi %s488_s14, %s609_s14  }
   0x7   : > { %s26_s21 = sadd.s32 1, %s458_s18  ;;  %s113_s22 = sadd.s32 1, %s450_s16 }
   0x8   : > { %p27_p0 = scmp.ge.s32.totalorder %s26_s21, 2  ;;  %p123_p1 = scmp.ne.s32.totalorder %s450_s16, %s446_s15 }
   0x9   : > { %p124_p2 = scmp.eq.s32.totalorder %s317_s0, 1  ;;  %p129_p3 = scmp.ne.s32.totalorder %s446_s15, %s442_s14 }
   0xa   : > { %s615_s21 = smov (%p27_p0, %s26_s21), 0  ;;  %p130_p5 = scmp.eq.s32.totalorder %s318_s20, 1 }
   0xb   : > { %p528_p4 = por %p124_p2, %p123_p1  ;;  %s108_s24 = ssub.s32 %s458_s18, %s615_s21 }
   0xc   : > { %p322_p6 = scmp.ge.s32.totalorder %s462_s19, 1  ;;  %p111_p7 = scmp.eq.s32.totalorder %s108_s24, 0 }
   0xd   : > { %p535_p8 = por %p130_p5, %p129_p3  ;;  %p168_p9 = scmp.lt.s32.totalorder %s462_s19, 3 }
   0xe   : > { %s541_s26 = scalar_select %p111_p7, %s450_s16, %s113_s22  }
   0xf   : > { %p169_p10 = pnand %p322_p6, %p168_p9 }
  0x10   : > { %s195_s27 = sand.u32 (!%p169_p10), 1, %s446_s15   ;;  %p202_p11 = scmp.lt.s32.totalorder (!%p169_p10), %s454_s17, 1  ;;  %v211_v0 = vld [vmem:[%s604_s1] sm:$0x3] (!%p169_p10) }
  0x11   : > { %172 = sbr.rel (%p169_p10) target bundleno = 48 (0x30), region = 32  ;;  %s323_s28 = sshll.u32 (!%p169_p10), %s195_s27, 1 }
  0x12   : > { %s210_s29 = sld [smem:[#allocation2]] (!%p169_p10)  ;;  %s197_s10 = scalar_lea.vmem (!%p169_p10), [#allocation3], %s323_s28 }
  0x13   : > { %s231_s11 = sshll.u32 (!%p169_p10), %s197_s10, 4  ;;  %s326_s12 = sshll.u32 (!%p169_p10), %s454_s17, 5  ;;  %s553_s11 = int_to_ptr.vmem [resolvable:$true] %s231_s11 }
  0x14   : > { %s558_s20 = scalar_lea.hbm (!%p169_p10), %s606_s3, %s326_s12  ;;  %s217_s22 = scalar_lea.sflag (!%p169_p10), [#allocation4], %s195_s27 }
  0x15   : > { %s384_s24 = scalar_lea.vmem (!%p169_p10), %s553_s11, 32 }
  0x16   : > { %p385_p12 = scmp.ne.s32.totalorder (!%p169_p10), %s553_s11, %s384_s24 }
  0x18   : > { %s203_s30 = scalar_select %p202_p11, %s454_s17, 1  ;;  %v212_v2 = vstv %s210_s29 }
  0x19   : > { %v213_v3 = vmul.f32 %v212_v2, %v211_v0  ;;  %p386_p13 = pnand %p385_p12, %p528_p4  ;;  %s464_s17 = smov [#allocation3]  }
  0x1a   : > { %s324_s4 = sshll.u32 %s203_s30, 1  ;;  %s388_s28 = sshll.u32 %s464_s17, 4  ;;  %s389_s28 = int_to_ptr.vmem [resolvable:$false] %s388_s28 }
  0x1b   : > { %s208_s9 = scalar_lea.vmem %s605_s2, %s324_s4  ;;  %p387_p0 = pneg %p386_p13 }
  0x1c   : > { %v209_v1 = vld [vmem:[%s208_s9] sm:$0x3]  ;;  %s390_s29 = scalar_lea.vmem %s389_s28, 64  ;;  %p391_p1 = scmp.lt.s32.totalorder %s553_s11, %s389_s28 }
  0x1d   : > { %v214_v4 = vadd.f32 %v213_v3, %v209_v1  ;;  %p392_p2 = scmp.lt.s32.totalorder %s390_s29, %s384_s24 }
  0x1f   : > { %215 = vst [vmem:[%s197_s10] sm:$0x3] %v214_v4  ;;  %p393_p3 = por %p392_p2, %p391_p1 }
  0x21   : > { %p394_p5 = pnand %p393_p3, %p387_p0 }
  0x23   : > { %397 = shalt.err (!%p394_p5)
}
  0x24   : > { %s398_s27 = scalar_lea.hbm %s558_s20, 32  ;;  %s402_s5 = scalar_lea.hbm %s606_s3, 64 }
  0x25   : > { %p399_p6 = scmp.ne.s32.totalorder %s558_s20, %s398_s27  ;;  %p403_p10 = scmp.lt.u32.totalorder %s558_s20, %s606_s3 }
  0x26   : > { %p404_p11 = scmp.lt.u32.totalorder %s402_s5, %s398_s27  ;;  %p406_p13 = scmp.lt.u32.totalorder %s398_s27, %s558_s20 }
  0x27   : > { %p400_p7 = pnand %p399_p6, %p528_p4 }
  0x28   : > { %p405_p12 = por %p404_p11, %p403_p10 }
  0x29   : > { %p401_p9 = pneg %p400_p7 }
  0x2a   : > { %p407_p0 = por %p406_p13, %p405_p12 }
  0x2c   : > { %p408_p1 = pnand %p407_p0, %p401_p9 }
  0x2e   : > { %411 = shalt.err (!%p408_p1)
}
  0x2f   : > { %329 = dma.vmem_to_hbm [thread:$0]  (%p528_p4), %s553_s11, 32, %s558_s20, %s217_s22  }
  0x30 PF: > { %p335_p2 = scmp.ge.s32.totalorder %s462_s19, 2  ;;  %s243_s8 = sand.u32 1, %s442_s14  }
  0x31   : > { %s244_s9 = scalar_lea.sflag [#allocation4], %s243_s8 }
  0x32   : > { %p332_p3 = pnand %p335_p2, %p535_p8 }
  0x34   : > { %437 = dma.done.wait (!%p332_p3), %s244_s9, 32  }
  0x35   : > { %439 = vsyncadd (!%p332_p3), %s244_s9, 4294967264  ;;  %s17_s19 = sadd.s32 1, %s462_s19   ;;  %s609_s14 = smov %s446_s15 }
  0x36   : > { %p14_p5 = scmp.ge.s32.totalorder %s17_s19, 4   ;;  %s610_s15 = smov %s450_s16 }
  0x37   : > { %s611_s16 = smov %s541_s26  ;;  %s612_s17 = smov %s458_s18 }
  0x38   : > { %s613_s18 = smov %s615_s21  ;;  %16 = sbr.rel (!%p14_p5) target bundleno = 6 (0x6), region = 70 }
  0x3f   :  { %249 = vsyncpa [#allocation4], 1 }
  0x40   :  { %251 = vsyncpa [#allocation4 + $0x1], 1 }

</bundles_post_ra>
